<compile_context>
chip_gen: v7x
topology: tpu7x:2x2x1
jax: 0.10.0
libtpu: 0.0.40
codegen_flags: <defaults>
</compile_context>

<pallas_src>
import functools

import jax
import jax.numpy as jnp
from jax.experimental import pallas as pl
from jax.experimental.pallas import tpu as pltpu

# ----------------------- DenseNet121 configuration ------------------------
GROWTH = 32
BN_SIZE = 4
BLOCK_CONFIG = (6, 12, 24, 16)
NUM_INIT = 64
NUM_LABELS = 15
BN_EPS = 1e-5

TM = 512                     # target M (pixel) tile for matmul-style kernels
POOL_TM = 64                 # target leading tile (rows of 2 input lines) for pooling


def _pick_vmem_limit():
    # Generation-aware scoped-VMEM budget: ~48 MiB on v7x (64 MiB physical),
    # up to 96 MiB on v5e/v6e (128 MiB physical); safe fallback if query unavailable.
    try:
        info = pltpu.get_tpu_info()
        cap = getattr(info, "vmem_capacity_bytes", 0) or 0
        if cap > 0:
            return int(min(cap * 3 // 4, 96 * 1024 * 1024))
    except Exception:
        pass
    return 48 * 1024 * 1024


VMEM_LIMIT_BYTES = _pick_vmem_limit()


def _round_up(x, m):
    return ((x + m - 1) // m) * m


def _pad2d(a, rows, cols):
    r, c = a.shape
    if r == rows and c == cols:
        return a
    return jnp.pad(a, ((0, rows - r), (0, cols - c)))


def _bn_scale_shift(bn):
    scale = bn["gamma"] / jnp.sqrt(bn["var"] + BN_EPS)
    shift = bn["beta"] - bn["mean"] * scale
    return scale, shift


def _pick_m_tile(M, target=TM):
    """Pick (tm, Mp): tm is a sublane-legal M tile, prefer tm | M (no pad copy) and >=2 steps."""
    if M <= 16:
        return M, M                            # single block; tm == full dim is legal
    cap = max(8, min(target, (M // 2) // 8 * 8))
    for d in range(cap, 7, -8):
        if M % d == 0:
            return d, M
    nsteps = -(-M // cap)
    tm = _round_up(-(-M // nsteps), 8)
    return tm, nsteps * tm


def _pick_leading_tile(M, target=POOL_TM):
    """Leading (outer) dim tile: any divisor of M, prefer >=2 grid steps (v7x megacore)."""
    cap = min(target, M)
    if M > 1:
        cap = min(cap, max(1, M // 2))
    for d in range(cap, 0, -1):
        if M % d == 0:
            return d
    return 1


# --------------------------- fused matmul kernel ----------------------------
def _fused_matmul_kernel(*refs, has_pre, has_post):
    a_ref, b_ref = refs[0], refs[1]
    o_ref = refs[-1]
    nxt = 2
    a = a_ref[...]
    if has_pre:        # per-K-channel BN + ReLU prologue (f32 math)
        psc_ref, psh_ref = refs[nxt], refs[nxt + 1]
        nxt += 2
        a = jnp.maximum(a.astype(jnp.float32) * psc_ref[...] + psh_ref[...], 0.0)
        a = a.astype(jnp.bfloat16)
    r = jnp.dot(a, b_ref[...], preferred_element_type=jnp.float32)
    if has_post:       # per-N-channel BN + ReLU epilogue
        osc_ref, osh_ref = refs[nxt], refs[nxt + 1]
        r = jnp.maximum(r * osc_ref[...] + osh_ref[...], 0.0)
    o_ref[...] = r.astype(o_ref.dtype)


def fused_matmul(a, b, pre_scale=None, pre_shift=None,
                 post_scale=None, post_shift=None, out_dtype=jnp.bfloat16):
    """out = [relu(so*(.)+to)]( [relu(sp*a+tp)] @ b ); K and N collapsed into the block."""
    M, K = a.shape
    K2, N = b.shape
    assert K == K2
    has_pre = pre_scale is not None
    has_post = post_scale is not None

    tm, Mp = _pick_m_tile(M)
    a_p = a.astype(jnp.bfloat16)
    if Mp != M:
        a_p = jnp.pad(a_p, ((0, Mp - M), (0, 0)))
    b_p = b.astype(jnp.bfloat16)

    args = [a_p, b_p]
    in_specs = [pl.BlockSpec((tm, K), lambda i: (i, 0)),
                pl.BlockSpec((K, N), lambda i: (0, 0))]
    if has_pre:
        args += [pre_scale.reshape(1, K).astype(jnp.float32),
                 pre_shift.reshape(1, K).astype(jnp.float32)]
        in_specs += [pl.BlockSpec((1, K), lambda i: (0, 0)),
                     pl.BlockSpec((1, K), lambda i: (0, 0))]
    if has_post:
        args += [post_scale.reshape(1, N).astype(jnp.float32),
                 post_shift.reshape(1, N).astype(jnp.float32)]
        in_specs += [pl.BlockSpec((1, N), lambda i: (0, 0)),
                     pl.BlockSpec((1, N), lambda i: (0, 0))]

    out = pl.pallas_call(
        functools.partial(_fused_matmul_kernel, has_pre=has_pre, has_post=has_post),
        out_shape=jax.ShapeDtypeStruct((Mp, N), out_dtype),
        grid=(Mp // tm,),
        in_specs=in_specs,
        out_specs=pl.BlockSpec((tm, N), lambda i: (i, 0)),
        compiler_params=pltpu.CompilerParams(
            dimension_semantics=("parallel",),
            vmem_limit_bytes=VMEM_LIMIT_BYTES),
    )(*args)
    return out[:M] if Mp != M else out


# -------------------- fused dense-layer (per-pixel) kernel -------------------
def _dense_pixel_kernel(x_ref, s1_ref, t1_ref, w1_ref, s2_ref, t2_ref, w2_ref, o_ref):
    # bn1 -> ReLU -> 1x1 conv -> bn2 -> ReLU -> implicit-GEMM 3x3 conv (packed taps)
    a = jnp.maximum(x_ref[...].astype(jnp.float32) * s1_ref[...] + t1_ref[...], 0.0)
    t = jnp.dot(a.astype(jnp.bfloat16), w1_ref[...], preferred_element_type=jnp.float32)
    t = jnp.maximum(t * s2_ref[...] + t2_ref[...], 0.0)
    z = jnp.dot(t.astype(jnp.bfloat16), w2_ref[...], preferred_element_type=jnp.float32)
    o_ref[...] = z.astype(o_ref.dtype)


def dense_layer_pixel(x2d, layer):
    """(M, Cin) -> (M, 9*GROWTH) packed per-tap contributions of one dense layer."""
    M, C = x2d.shape
    B = BN_SIZE * GROWTH                                   # 128 bottleneck channels
    NT = 9 * GROWTH                                        # 288 packed tap outputs
    s1, t1 = _bn_scale_shift(layer["bn1"])
    s2, t2 = _bn_scale_shift(layer["bn2"])
    w1 = layer["conv1"].reshape(B, C).T.astype(jnp.bfloat16)                     # (C, 128)
    w2 = jnp.transpose(layer["conv2"], (1, 2, 3, 0)).reshape(B, NT)              # (128, 288)
    w2 = w2.astype(jnp.bfloat16)

    tm, Mp = _pick_m_tile(M)
    a_p = x2d.astype(jnp.bfloat16)
    if Mp != M:
        a_p = jnp.pad(a_p, ((0, Mp - M), (0, 0)))

    out = pl.pallas_call(
        _dense_pixel_kernel,
        out_shape=jax.ShapeDtypeStruct((Mp, NT), jnp.bfloat16),
        grid=(Mp // tm,),
        in_specs=[
            pl.BlockSpec((tm, C), lambda i: (i, 0)),
            pl.BlockSpec((1, C), lambda i: (0, 0)),
            pl.BlockSpec((1, C), lambda i: (0, 0)),
            pl.BlockSpec((C, B), lambda i: (0, 0)),
            pl.BlockSpec((1, B), lambda i: (0, 0)),
            pl.BlockSpec((1, B), lambda i: (0, 0)),
            pl.BlockSpec((B, NT), lambda i: (0, 0)),
        ],
        out_specs=pl.BlockSpec((tm, NT), lambda i: (i, 0)),
        compiler_params=pltpu.CompilerParams(
            dimension_semantics=("parallel",),
            vmem_limit_bytes=VMEM_LIMIT_BYTES),
    )(a_p,
      s1.reshape(1, C).astype(jnp.float32), t1.reshape(1, C).astype(jnp.float32),
      w1,
      s2.reshape(1, B).astype(jnp.float32), t2.reshape(1, B).astype(jnp.float32),
      w2)
    return out[:M] if Mp != M else out


def dense_layer(x, layer):
    n, h, w, c = x.shape
    m = n * h * w
    z = dense_layer_pixel(x.reshape(m, c), layer)          # (m, 288) bf16
    z = z.reshape(n, h, w, 9, GROWTH)
    # 3x3 conv = 9 spatially shifted adds of the packed per-tap contributions.
    zp = jnp.pad(z, ((0, 0), (1, 1), (1, 1), (0, 0), (0, 0)))
    y = jnp.zeros((n, h, w, GROWTH), jnp.float32)
    for i in range(3):
        for j in range(3):
            y = y + zp[:, i:i + h, j:j + w, i * 3 + j, :].astype(jnp.float32)
    # TODO(synk): write y lane-dense into a preallocated concat slab (Pallas out BlockSpec
    # channel offset + input_output_aliases) to remove the remaining O(L^2) concat copies;
    # left as jnp.concatenate because of the padded-row aliasing hazard flagged in review.
    return jnp.concatenate([x, y.astype(x.dtype)], axis=-1)


# ------------------------------ pooling kernels ------------------------------
def _maxpool_kernel(xe_ref, xo_ref, o_ref):
    # 3x3 stride-2 pad-1 maxpool on a zero-padded, post-ReLU map (zero pad == -inf pad).
    xe = xe_ref[0]                                # (h+2, wo+1, c): padded cols 2x
    xo = xo_ref[0]                                # (h+2, wo+1, c): padded cols 2x+1
    hp, wo1, c = xe.shape
    ho, wo = (hp - 2) // 2, wo1 - 1
    a = jnp.maximum(xe, xo)                       # cols {2x, 2x+1}
    colmax = jnp.maximum(a[:, :wo, :], xe[:, 1:, :])   # cols {2x, 2x+1, 2x+2}
    cr = colmax.reshape(ho + 1, 2, wo, c)         # outer-dim split of rows
    out = jnp.maximum(jnp.max(cr, axis=1)[:ho], cr[1:, 0])   # rows {2y, 2y+1, 2y+2}
    o_ref[0] = out.astype(o_ref.dtype)


def max_pool_3x3_s2_p1(x):
    n, h, w, c = x.shape
    assert h % 2 == 0 and w % 2 == 0
    ho, wo = h // 2, w // 2
    xp = jnp.pad(x, ((0, 0), (1, 1), (1, 1), (0, 0)))
    xe = xp[:, :, 0::2, :]                        # (n, h+2, wo+1, c) even padded columns
    xo = xp[:, :, 1::2, :]                        # (n, h+2, wo+1, c) odd padded columns
    return pl.pallas_call(
        _maxpool_kernel,
        out_shape=jax.ShapeDtypeStruct((n, ho, wo, c), x.dtype),
        grid=(n,),
        in_specs=[pl.BlockSpec((1, h + 2, wo + 1, c), lambda i: (i, 0, 0, 0)),
                  pl.BlockSpec((1, h + 2, wo + 1, c), lambda i: (i, 0, 0, 0))],
        out_specs=pl.BlockSpec((1, ho, wo, c), lambda i: (i, 0, 0, 0)),
        compiler_params=pltpu.CompilerParams(
            dimension_semantics=("parallel",),
            vmem_limit_bytes=VMEM_LIMIT_BYTES),
    )(xe, xo)


def _transition_pool_kernel(xe_ref, xo_ref, sc_ref, sh_ref, o_ref):
    # fused BN + ReLU prologue, then 2x2 average pool (outer-dim sum only)
    sc = sc_ref[...]
    sh = sh_ref[...]
    a = jnp.maximum(xe_ref[...].astype(jnp.float32) * sc + sh, 0.0)
    b = jnp.maximum(xo_ref[...].astype(jnp.float32) * sc + sh, 0.0)
    s = a + b                                     # (tm, 2, wh, c): cols {2x, 2x+1}
    o_ref[...] = (jnp.sum(s, axis=1) * 0.25).astype(o_ref.dtype)


def transition(x, t):
    n, h, w, c = x.shape
    assert h % 2 == 0 and w % 2 == 0
    hh, wh = h // 2, w // 2
    mh = n * hh
    sc, sh = _bn_scale_shift(t["bn"])
    xe = x[:, :, 0::2, :].reshape(mh, 2, wh, c)   # even columns, rows grouped in pairs
    xo = x[:, :, 1::2, :].reshape(mh, 2, wh, c)   # odd columns
    tm = _pick_leading_tile(mh)
    pooled = pl.pallas_call(
        _transition_pool_kernel,
        out_shape=jax.ShapeDtypeStruct((mh, wh, c), jnp.bfloat16),
        grid=(mh // tm,),
        in_specs=[pl.BlockSpec((tm, 2, wh, c), lambda i: (i, 0, 0, 0)),
                  pl.BlockSpec((tm, 2, wh, c), lambda i: (i, 0, 0, 0)),
                  pl.BlockSpec((1, 1, 1, c), lambda i: (0, 0, 0, 0)),
                  pl.BlockSpec((1, 1, 1, c), lambda i: (0, 0, 0, 0))],
        out_specs=pl.BlockSpec((tm, wh, c), lambda i: (i, 0, 0)),
        compiler_params=pltpu.CompilerParams(
            dimension_semantics=("parallel",),
            vmem_limit_bytes=VMEM_LIMIT_BYTES),
    )(xe, xo,
      sc.reshape(1, 1, 1, c).astype(jnp.float32),
      sh.reshape(1, 1, 1, c).astype(jnp.float32))
    # 1x1 transition conv commutes with the 2x2 average pool, so it runs on 4x fewer pixels.
    wmat = t["conv"].reshape(c // 2, c).T
    y = fused_matmul(pooled.reshape(mh * wh, c), wmat)
    return y.reshape(n, hh, wh, c // 2)


# ------------------------------- head kernel --------------------------------
def _head_kernel(x_ref, sc_ref, sh_ref, w_ref, b_ref, o_ref):
    # norm5 + ReLU + global average pool + Linear + Sigmoid, all in one call
    a = jnp.maximum(x_ref[...].astype(jnp.float32) * sc_ref[...] + sh_ref[...], 0.0)
    feats = jnp.sum(a, axis=1) * (1.0 / x_ref.shape[1])                # (N, C)
    y = jnp.dot(feats.astype(jnp.bfloat16), w_ref[...],
                preferred_element_type=jnp.float32) + b_ref[...]
    o_ref[...] = 1.0 / (1.0 + jnp.exp(-y))                              # exact sigmoid


def head(x, bn, fc_w, fc_b):
    n, h, w, c = x.shape
    scale, shift = _bn_scale_shift(bn)
    L = fc_w.shape[1]
    Lp = _round_up(L, 128)                        # lane-dense padded classifier output
    w_p = _pad2d(fc_w.astype(jnp.bfloat16), c, Lp)
    b_p = _pad2d(fc_b.reshape(1, L).astype(jnp.float32), 1, Lp)
    hw = h * w
    out = pl.pallas_call(
        _head_kernel,
        out_shape=jax.ShapeDtypeStruct((n, Lp), jnp.float32),
        grid=(1,),
        in_specs=[
            pl.BlockSpec((n, hw, c), lambda i: (0, 0, 0)),
            pl.BlockSpec((1, 1, c), lambda i: (0, 0, 0)),
            pl.BlockSpec((1, 1, c), lambda i: (0, 0, 0)),
            pl.BlockSpec((c, Lp), lambda i: (0, 0)),
            pl.BlockSpec((1, Lp), lambda i: (0, 0)),
        ],
        out_specs=pl.BlockSpec((n, Lp), lambda i: (0, 0)),
        compiler_params=pltpu.CompilerParams(vmem_limit_bytes=VMEM_LIMIT_BYTES),
    )(x.reshape(n, hw, c),
      scale.reshape(1, 1, c).astype(jnp.float32),
      shift.reshape(1, 1, c).astype(jnp.float32), w_p, b_p)
    return out[:, :L]


# ------------------------------ glue (JAX) ----------------------------------
def _im2col(x, kh, kw, stride, pad):
    """x: (N,H,W,C) NHWC -> (N*Ho*Wo, kh*kw*C) columns. Used only for the 3-channel stem."""
    n, h, w, c = x.shape
    ho = (h + 2 * pad - kh) // stride + 1
    wo = (w + 2 * pad - kw) // stride + 1
    xp = jnp.pad(x, ((0, 0), (pad, pad), (pad, pad), (0, 0))) if pad else x
    views = []
    for i in range(kh):
        for j in range(kw):
            views.append(xp[:, i:i + stride * (ho - 1) + 1:stride,
                            j:j + stride * (wo - 1) + 1:stride, :])
    cols = jnp.concatenate(views, axis=-1).reshape(n * ho * wo, kh * kw * c)
    return cols, ho, wo


def _conv_weight_matrix(w):
    cout, cin, kh, kw = w.shape
    return jnp.transpose(w, (2, 3, 1, 0)).reshape(kh * kw * cin, cout)


# ----------------------------- parameters -----------------------------------
def init_bn(c):
    return {"gamma": jnp.ones((c,), jnp.float32),
            "beta": jnp.zeros((c,), jnp.float32),
            "mean": jnp.zeros((c,), jnp.float32),
            "var": jnp.ones((c,), jnp.float32)}


def init_conv(key, cout, cin, kh, kw):
    fan_in = cin * kh * kw
    std = (2.0 / fan_in) ** 0.5  # kaiming-normal (torchvision densenet init)
    return std * jax.random.normal(key, (cout, cin, kh, kw), jnp.float32)


def make_params(key):
    counter = [0]

    def nk():
        counter[0] += 1
        return jax.random.fold_in(key, counter[0])

    params = {"conv0": init_conv(nk(), NUM_INIT, 3, 7, 7), "bn0": init_bn(NUM_INIT)}
    blocks, trans = [], []
    c = NUM_INIT
    for bi, n_layers in enumerate(BLOCK_CONFIG):
        layers = []
        for _ in range(n_layers):
            layers.append({
                "bn1": init_bn(c),
                "conv1": init_conv(nk(), BN_SIZE * GROWTH, c, 1, 1),
                "bn2": init_bn(BN_SIZE * GROWTH),
                "conv2": init_conv(nk(), GROWTH, BN_SIZE * GROWTH, 3, 3),
            })
            c += GROWTH
        blocks.append(layers)
        if bi < len(BLOCK_CONFIG) - 1:
            trans.append({"bn": init_bn(c), "conv": init_conv(nk(), c // 2, c, 1, 1)})
            c //= 2
    params["blocks"] = blocks
    params["trans"] = trans
    params["bn_final"] = init_bn(c)  # c == 1024
    bound = 1.0 / (c ** 0.5)
    params["fc_w"] = jax.random.uniform(nk(), (c, NUM_LABELS), jnp.float32, -bound, bound)
    params["fc_b"] = jax.random.uniform(nk(), (NUM_LABELS,), jnp.float32, -bound, bound)
    return params


# ------------------------------- forward ------------------------------------
def densenet_xray_forward(params, x_nchw):
    x = jnp.transpose(x_nchw, (0, 2, 3, 1)).astype(jnp.bfloat16)   # NCHW -> NHWC, bf16
    n, h, w, _ = x.shape
    assert h % 32 == 0 and w % 32 == 0, "spatial dims must be multiples of 32"
    # stem: conv0 (7x7, s2, p3) with BN0 + ReLU fused into the matmul epilogue, then maxpool
    sc0, sh0 = _bn_scale_shift(params["bn0"])
    cols, ho, wo = _im2col(x, 7, 7, 2, 3)
    x = fused_matmul(cols, _conv_weight_matrix(params["conv0"]),
                     post_scale=sc0, post_shift=sh0).reshape(n, ho, wo, NUM_INIT)
    x = max_pool_3x3_s2_p1(x)
    # dense blocks (one fused pallas_call per layer) + transitions
    for bi, block in enumerate(params["blocks"]):
        for layer in block:
            x = dense_layer(x, layer)
        if bi < len(params["blocks"]) - 1:
            x = transition(x, params["trans"][bi])
    # norm5 + ReLU + global avg pool + Linear + Sigmoid (single fused kernel)
    return head(x, params["bn_final"], params["fc_w"], params["fc_b"])


# --------------------------------- main --------------------------------------
if __name__ == "__main__":
    key = jax.random.PRNGKey(0)
    params = make_params(key)
    # Small input consistent with the module: NCHW, 3 channels, 32x32
    x = jax.random.normal(jax.random.fold_in(key, 12345), (2, 3, 32, 32), jnp.float32)
    out = densenet_xray_forward(params, x)
    out = jax.block_until_ready(out)
    assert out.shape == (2, NUM_LABELS), out.shape
    assert out.dtype == jnp.float32
    assert bool(jnp.all(jnp.isfinite(out)))
    assert bool(jnp.all((out >= 0.0) & (out <= 1.0)))  # sigmoid outputs
    print("KERNEL_OK")
</pallas_src>

<mosaic_0001>
module attributes {stable_mosaic.version = 11 : i64} {
  func.func @_fused_matmul_kernel(%arg0: i32, %arg1: memref<256x147xbf16, #tpu.memory_space<vmem>>, %arg2: memref<147x64xbf16, #tpu.memory_space<vmem>>, %arg3: memref<1x64xf32, #tpu.memory_space<vmem>>, %arg4: memref<1x64xf32, #tpu.memory_space<vmem>>, %arg5: memref<256x64xbf16, #tpu.memory_space<vmem>>) attributes {dimension_semantics = [#tpu.dimension_semantics<parallel>], iteration_bounds = array<i64: 2>, scalar_prefetch = 0 : i64, scratch_operands = 0 : i64, tpu.core_type = #tpu.core_type<tc>, window_params = [{transform_indices = @transform_0, window_bounds = array<i64: 256, 147>}, {pipeline_mode = #tpu.pipeline_mode<synchronous>, transform_indices = @transform_1, window_bounds = array<i64: 147, 64>}, {pipeline_mode = #tpu.pipeline_mode<synchronous>, transform_indices = @transform_2, window_bounds = array<i64: 1, 64>}, {pipeline_mode = #tpu.pipeline_mode<synchronous>, transform_indices = @transform_3, window_bounds = array<i64: 1, 64>}, {transform_indices = @transform_4, window_bounds = array<i64: 256, 64>}]} {
    %c0 = arith.constant 0 : index
    %c0_0 = arith.constant 0 : index
    %0 = vector.load %arg1[%c0, %c0_0] : memref<256x147xbf16, #tpu.memory_space<vmem>>, vector<256x147xbf16>
    %c0_1 = arith.constant 0 : index
    %c0_2 = arith.constant 0 : index
    %1 = vector.load %arg2[%c0_1, %c0_2] : memref<147x64xbf16, #tpu.memory_space<vmem>>, vector<147x64xbf16>
    %cst = arith.constant dense<0.000000e+00> : vector<256x64xf32>
    %2 = tpu.matmul %0, %1, %cst {dimension_numbers = #tpu.dot_dimension_numbers<[1], [0], [0], [1], [0, 0, 1, 1], [], []>} : vector<256x147xbf16>, vector<147x64xbf16>, vector<256x64xf32> -> vector<256x64xf32>
    %c0_3 = arith.constant 0 : index
    %c0_4 = arith.constant 0 : index
    %3 = vector.load %arg3[%c0_3, %c0_4] : memref<1x64xf32, #tpu.memory_space<vmem>>, vector<1x64xf32>
    %4 = vector.broadcast %3 : vector<1x64xf32> to vector<256x64xf32>
    %5 = arith.mulf %2, %4 : vector<256x64xf32>
    %c0_5 = arith.constant 0 : index
    %c0_6 = arith.constant 0 : index
    %6 = vector.load %arg4[%c0_5, %c0_6] : memref<1x64xf32, #tpu.memory_space<vmem>>, vector<1x64xf32>
    %7 = vector.broadcast %6 : vector<1x64xf32> to vector<256x64xf32>
    %8 = arith.addf %5, %7 : vector<256x64xf32>
    %cst_7 = arith.constant 0.000000e+00 : f32
    %9 = vector.broadcast %cst_7 : f32 to vector<256x64xf32>
    %10 = arith.maximumf %8, %9 : vector<256x64xf32>
    %11 = arith.truncf %10 : vector<256x64xf32> to vector<256x64xbf16>
    %c0_8 = arith.constant 0 : index
    %c0_9 = arith.constant 0 : index
    %12 = vector.load %arg5[%c0_8, %c0_9] : memref<256x64xbf16, #tpu.memory_space<vmem>>, vector<256x64xbf16>
    tpu.vector_store %arg5[%c0_8, %c0_9], %11 {strides = array<i32>} : memref<256x64xbf16, #tpu.memory_space<vmem>>, vector<256x64xbf16>,
    return
  }
  func.func @transform_0(%arg0: i32) -> (i32, i32) {
    %c0_i32 = arith.constant 0 : i32
    %c0_i32_0 = arith.constant 0 : i32
    return %arg0, %c0_i32 : i32, i32
  }
  func.func @transform_1(%arg0: i32) -> (i32, i32) {
    %c0_i32 = arith.constant 0 : i32
    %c0_i32_0 = arith.constant 0 : i32
    %c0_i32_1 = arith.constant 0 : i32
    return %c0_i32, %c0_i32_0 : i32, i32
  }
  func.func @transform_2(%arg0: i32) -> (i32, i32) {
    %c0_i32 = arith.constant 0 : i32
    %c0_i32_0 = arith.constant 0 : i32
    %c0_i32_1 = arith.constant 0 : i32
    return %c0_i32, %c0_i32_0 : i32, i32
  }
  func.func @transform_3(%arg0: i32) -> (i32, i32) {
    %c0_i32 = arith.constant 0 : i32
    %c0_i32_0 = arith.constant 0 : i32
    %c0_i32_1 = arith.constant 0 : i32
    return %c0_i32, %c0_i32_0 : i32, i32
  }
  func.func @transform_4(%arg0: i32) -> (i32, i32) {
    %c0_i32 = arith.constant 0 : i32
    %c0_i32_0 = arith.constant 0 : i32
    return %arg0, %c0_i32 : i32, i32
  }
}

</mosaic_0001>

<bundles_post_ra>
// kernel: tpu_custom_call.1
= control target key start
LH: loop header
LB: loop body
LE: loop exit
PB: predicated region body
PF: predicated region fallthrough
CT: control target
= control target key end

     0   :  { %s1261_s15 = smov 0   ;;  %s1502_s0 = inlined_call_operand.vmem [shape: bf16[512,147], index: 0, kind: input, shape index: {}]   ;;  %s1503_s1 = inlined_call_operand.vmem [shape: bf16[147,64], index: 1, kind: input, shape index: {}]   ;;  %s1504_s2 = inlined_call_operand.vmem [shape: f32[1,64], index: 2, kind: input, shape index: {}]   ;;  %s1505_s3 = inlined_call_operand.vmem [shape: f32[1,64], index: 3, kind: input, shape index: {}]   ;;  %s1506_s4 = inlined_call_operand.vmem [shape: bf16[512,64], index: 4, kind: output, shape index: {}]  }
   0x1 LB: > { %s1001_s16 = sadd.s32 4294967295, %s1232_s15   ;;  %p1005_p0 = scmp.ge.s32.totalorder %s1232_s15, 1  ;;  %s1232_s15 = sphi %s1261_s15, %s14_s15  }
   0x2   : > { %p164_p1 = scmp.lt.s32.totalorder %s1232_s15, 3 }
   0x4   : > { %p165_p2 = pnand %p1005_p0, %p164_p1 }
   0x5   : > { %v1168_v0 = vld [vmem:[%s1503_s1] sm:$0xff] (!%p165_p2)   ;;  %v1234_v1 = vmov (!%p165_p2), 0   ;;  %v1169_v2 = vld [vmem:[%s1503_s1 + $0x8] sm:$0xff] (!%p165_p2)   ;;  %v1170_v3 = vld [vmem:[%s1503_s1 + $0x10] sm:$0xff] (!%p165_p2)   ;;  %s1006_s23 = sshll.u32 (!%p165_p2), %s1001_s16, 5  ;;  %vm457_vm0 = vcmask (!%p165_p2), 154624  }
   0x6   : > { %168 = sbr.rel (%p165_p2) target bundleno = 325 (0x145), region = 36  ;;  %513 = vmatprep.subr.bf16.mxu0 (!%p165_p2), %v1234_v1  ;;  %1138 = vmatprep.subr.bf16.mxu1 (!%p165_p2), %v1234_v1  ;;  %p192_p3 = scmp.lt.s32.totalorder (!%p165_p2), %s1006_s23, 63  ;;  %v1171_v4 = vld [vmem:[%s1503_s1 + $0x18] sm:$0xff] (!%p165_p2)   ;;  %v1172_v5 = vld [vmem:[%s1503_s1 + $0x20] sm:$0xff] (!%p165_p2)   ;;  %v1173_v8 = vld [vmem:[%s1503_s1 + $0x28] sm:$0xff] (!%p165_p2)   ;;  %vm506_vm1 = vcmask (!%p165_p2), 1040384  }
   0x7   : > { %514 = vmatpush1.bf16.msra.mxu0 (!%p165_p2), %v1168_v0  ;;  %1148 = vmatpush1.bf16.msra.mxu1 (!%p165_p2), %v1168_v0  ;;  %v1174_v9 = vld [vmem:[%s1503_s1 + $0x30] sm:$0xff] (!%p165_p2)   ;;  %v1175_v10 = vld [vmem:[%s1503_s1 + $0x38] sm:$0xff] (!%p165_p2)   ;;  %vm507_vm2 = vcmask (!%p165_p2), 1041408   ;;  %v1235_v11 = vmov (!%p165_p2), 65535   ;;  %v1176_v13 = vld [vmem:[%s1503_s1 + $0x40] sm:$0xff] (!%p165_p2)   ;;  %vm912_vm3 = vcmask (!%p165_p2), 519168  }
   0x8   : > { %515 = vmatprep.subr.bf16.mxu0 (!%p165_p2), %v1234_v1  ;;  %1139 = vmatprep.subr.bf16.mxu1 (!%p165_p2), %v1234_v1  ;;  %v508_v12 = vsel (!%p165_p2), %vm506_vm1, 4294967295, %v1235_v11  ;;  %v1177_v14 = vld [vmem:[%s1503_s1 + $0x48] ss:$0 sps:$4 sm:$0x33] (!%p165_p2)   ;;  %v1358_v47 = vld [vmem:[%s1504_s2] ss:$0 sm:$0xff] (!%p165_p2) }
   0x9   : > { %v509_v15 = vsel (!%p165_p2), %vm507_vm2, %v508_v12, 0  ;;  %v1363_v49 = vld [vmem:[%s1505_s3] ss:$0 sm:$0xff] (!%p165_p2) }
   0xa   : > { %v511_v16 = vand.u32 (!%p165_p2), %v1177_v14, %v509_v15 }
   0xb   : > { %516 = vmatpush1.bf16.msra.mxu0 (!%p165_p2), %v1169_v2  ;;  %1149 = vmatpush1.bf16.msra.mxu1 (!%p165_p2), %v1169_v2 }
   0xc   : > { %517 = vmatprep.subr.bf16.mxu0 (!%p165_p2), %v1234_v1  ;;  %1140 = vmatprep.subr.bf16.mxu1 (!%p165_p2), %v1234_v1 }
   0xd   : > { %s1508_s23 = smov (!%p192_p3, %s1006_s23), 63 }
   0xe   : > { %s1105_s26 = sshll.u32 %s1508_s23, 3  ;;  %s1010_s21 = sshll.u32 %s1508_s23, 2 }
   0xf   : > { %518 = vmatpush1.bf16.msra.mxu0 %v1170_v3  ;;  %1150 = vmatpush1.bf16.msra.mxu1 %v1170_v3  ;;  %s1287_s29 = scalar_lea.vmem %s1502_s0, %s1105_s26  ;;  %s1377_s23 = scalar_lea.vmem %s1506_s4, %s1010_s21 }
  0x10   : > { %519 = vmatprep.subr.bf16.mxu0 %v1234_v1  ;;  %1141 = vmatprep.subr.bf16.mxu1 %v1234_v1  ;;  %v1180_v6 = vld [vmem:[%s1287_s29 + $0x4] ss:$8 sps:$4 sm:$0xff]   ;;  %v1178_v17 = vld [vmem:[%s1287_s29] ss:$8 sps:$4 sm:$0xff]   ;;  %v1184_v19 = vld [vmem:[%s1287_s29 + $0x14] ss:$8 sps:$4 sm:$0xff]  }
  0x11   : > { %v1183_v7 = vld [vmem:[%s1287_s29 + $0x84] ss:$8 sps:$4 sm:$0xff]   ;;  %1053 = vmatprep.mubr.msk.bf16.mxu0 %vm457_vm0, %v1180_v6  ;;  %v1181_v18 = vld [vmem:[%s1287_s29 + $0x80] ss:$8 sps:$4 sm:$0xff]   ;;  %v1186_v20 = vld [vmem:[%s1287_s29 + $0x94] ss:$8 sps:$4 sm:$0xff]  }
  0x12   : > { %1061 = vmatprep.mubr.msk.bf16.mxu1 %vm457_vm0, %v1183_v7  ;;  %v1188_v21 = vld [vmem:[%s1287_s29 + $0x10] ss:$8 sps:$4 sm:$0xff]   ;;  %v1190_v23 = vld [vmem:[%s1287_s29 + $0x24] ss:$8 sps:$4 sm:$0xff]   ;;  %v1194_v25 = vld [vmem:[%s1287_s29 + $0x20] ss:$8 sps:$4 sm:$0xff]  }
  0x13   : > { %520 = vmatpush1.bf16.msra.mxu0 %v1171_v4  ;;  %1151 = vmatpush1.bf16.msra.mxu1 %v1171_v4  ;;  %v1189_v22 = vld [vmem:[%s1287_s29 + $0x90] ss:$8 sps:$4 sm:$0xff]   ;;  %v1192_v24 = vld [vmem:[%s1287_s29 + $0xa4] ss:$8 sps:$4 sm:$0xff]   ;;  %v1195_v26 = vld [vmem:[%s1287_s29 + $0xa0] ss:$8 sps:$4 sm:$0xff]  }
  0x14   : > { %521 = vmatprep.subr.bf16.mxu0 %v1234_v1  ;;  %1142 = vmatprep.subr.bf16.mxu1 %v1234_v1  ;;  %v1196_v27 = vld [vmem:[%s1287_s29 + $0x34] ss:$8 sps:$4 sm:$0xff]   ;;  %v1200_v29 = vld [vmem:[%s1287_s29 + $0x30] ss:$8 sps:$4 sm:$0xff]   ;;  %v1202_v31 = vld [vmem:[%s1287_s29 + $0x44] ss:$8 sps:$4 sm:$0xff]  }
  0x15   : > { %v1198_v28 = vld [vmem:[%s1287_s29 + $0xb4] ss:$8 sps:$4 sm:$0xff]   ;;  %v1201_v30 = vld [vmem:[%s1287_s29 + $0xb0] ss:$8 sps:$4 sm:$0xff]   ;;  %v1204_v32 = vld [vmem:[%s1287_s29 + $0xc4] ss:$8 sps:$4 sm:$0xff]  }
  0x16   : > { %v1206_v33 = vld [vmem:[%s1287_s29 + $0x40] ss:$8 sps:$4 sm:$0xff]   ;;  %v1208_v35 = vld [vmem:[%s1287_s29 + $0x54] ss:$8 sps:$4 sm:$0xff]   ;;  %v1212_v37 = vld [vmem:[%s1287_s29 + $0x50] ss:$8 sps:$4 sm:$0xff]  }
  0x17   : > { %522 = vmatpush1.bf16.msra.mxu0 %v1172_v5  ;;  %1152 = vmatpush1.bf16.msra.mxu1 %v1172_v5  ;;  %v1207_v34 = vld [vmem:[%s1287_s29 + $0xc0] ss:$8 sps:$4 sm:$0xff]   ;;  %v1210_v36 = vld [vmem:[%s1287_s29 + $0xd4] ss:$8 sps:$4 sm:$0xff]   ;;  %v1213_v38 = vld [vmem:[%s1287_s29 + $0xd0] ss:$8 sps:$4 sm:$0xff]  }
  0x18   : > { %523 = vmatprep.subr.bf16.mxu0 %v1234_v1  ;;  %1143 = vmatprep.subr.bf16.mxu1 %v1234_v1  ;;  %v1214_v39 = vld [vmem:[%s1287_s29 + $0x64] ss:$8 sps:$4 sm:$0xff]   ;;  %v1218_v41 = vld [vmem:[%s1287_s29 + $0x60] ss:$8 sps:$4 sm:$0xff]   ;;  %v1220_v43 = vld [vmem:[%s1287_s29 + $0x74] ss:$8 sps:$4 sm:$0xff]  }
  0x19   : > { %v1216_v40 = vld [vmem:[%s1287_s29 + $0xe4] ss:$8 sps:$4 sm:$0xff]   ;;  %v1219_v42 = vld [vmem:[%s1287_s29 + $0xe0] ss:$8 sps:$4 sm:$0xff]   ;;  %v1222_v44 = vld [vmem:[%s1287_s29 + $0xf4] ss:$8 sps:$4 sm:$0xff]  }
  0x1a   : > { %v1224_v45 = vld [vmem:[%s1287_s29 + $0x70] ss:$8 sps:$4 sm:$0xff]  }
  0x1b   : > { %524 = vmatpush1.bf16.msra.mxu0 %v1173_v8  ;;  %1153 = vmatpush1.bf16.msra.mxu1 %v1173_v8  ;;  %v1225_v46 = vld [vmem:[%s1287_s29 + $0xf0] ss:$8 sps:$4 sm:$0xff]  }
  0x1c   : > { %525 = vmatprep.subr.bf16.mxu0 %v1234_v1  ;;  %1144 = vmatprep.subr.bf16.mxu1 %v1234_v1 }
  0x1f   : > { %526 = vmatpush1.bf16.msra.mxu0 %v1174_v9  ;;  %1154 = vmatpush1.bf16.msra.mxu1 %v1174_v9 }
  0x20   : > { %527 = vmatprep.subr.bf16.mxu0 %v1234_v1  ;;  %1145 = vmatprep.subr.bf16.mxu1 %v1234_v1 }
  0x23   : > { %528 = vmatpush1.bf16.msra.mxu0 %v1175_v10  ;;  %1155 = vmatpush1.bf16.msra.mxu1 %v1175_v10 }
  0x24   : > { %529 = vmatprep.subr.bf16.mxu0 %v1234_v1  ;;  %1146 = vmatprep.subr.bf16.mxu1 %v1234_v1 }
  0x27   : > { %530 = vmatpush1.bf16.msra.mxu0 %v1176_v13  ;;  %1156 = vmatpush1.bf16.msra.mxu1 %v1176_v13 }
  0x28   : > { %531 = vmatprep.subr.bf16.mxu0 %v1234_v1  ;;  %1147 = vmatprep.subr.bf16.mxu1 %v1234_v1 }
  0x2b   : > { %532 = vmatpush1.bf16.msra.mxu0 %v511_v16  ;;  %1157 = vmatpush1.bf16.msra.mxu1 %v511_v16 }
  0x2e   : > { %546 = vmatmul.mubr.bf16.vlgmr.msra.gmra.mrb[0].mxu0 %v1178_v17  ;;  %610 = vmatmul.mubr.bf16.vlgmr.msra.gmra.mrb[0].mxu1 %v1181_v18 }
  0x2f   : > { %1054 = vmatprep.mubr.msk.bf16.mxu0 %vm457_vm0, %v1184_v19  ;;  %1062 = vmatprep.mubr.msk.bf16.mxu1 %vm457_vm0, %v1186_v20 }
  0x36   : > { %554 = vmatmul.mubr.bf16.gmra.mrb[4].mxu0 %v1188_v21  ;;  %618 = vmatmul.mubr.bf16.gmra.mrb[4].mxu1 %v1189_v22 }
  0x37   : > { %1055 = vmatprep.mubr.msk.bf16.mxu0 %vm457_vm0, %v1190_v23  ;;  %1063 = vmatprep.mubr.msk.bf16.mxu1 %vm457_vm0, %v1192_v24 }
  0x3e   : > { %562 = vmatmul.mubr.bf16.gmra.mrb[8].mxu0 %v1194_v25  ;;  %626 = vmatmul.mubr.bf16.gmra.mrb[8].mxu1 %v1195_v26 }
  0x3f   : > { %1056 = vmatprep.mubr.msk.bf16.mxu0 %vm457_vm0, %v1196_v27  ;;  %1064 = vmatprep.mubr.msk.bf16.mxu1 %vm457_vm0, %v1198_v28 }
  0x46   : > { %570 = vmatmul.mubr.bf16.gmra.mrb[12].mxu0 %v1200_v29  ;;  %634 = vmatmul.mubr.bf16.gmra.mrb[12].mxu1 %v1201_v30 }
  0x47   : > { %1057 = vmatprep.mubr.msk.bf16.mxu0 %vm457_vm0, %v1202_v31  ;;  %1065 = vmatprep.mubr.msk.bf16.mxu1 %vm457_vm0, %v1204_v32 }
  0x4e   : > { %578 = vmatmul.mubr.bf16.gmra.mrb[16].mxu0 %v1206_v33  ;;  %642 = vmatmul.mubr.bf16.gmra.mrb[16].mxu1 %v1207_v34 }
  0x4f   : > { %1058 = vmatprep.mubr.msk.bf16.mxu0 %vm457_vm0, %v1208_v35  ;;  %1066 = vmatprep.mubr.msk.bf16.mxu1 %vm457_vm0, %v1210_v36 }
  0x56   : > { %586 = vmatmul.mubr.bf16.gmra.mrb[20].mxu0 %v1212_v37  ;;  %650 = vmatmul.mubr.bf16.gmra.mrb[20].mxu1 %v1213_v38 }
  0x57   : > { %1059 = vmatprep.mubr.msk.bf16.mxu0 %vm457_vm0, %v1214_v39  ;;  %1067 = vmatprep.mubr.msk.bf16.mxu1 %vm457_vm0, %v1216_v40 }
  0x5e   : > { %594 = vmatmul.mubr.bf16.gmra.mrb[24].mxu0 %v1218_v41  ;;  %658 = vmatmul.mubr.bf16.gmra.mrb[24].mxu1 %v1219_v42 }
  0x5f   : > { %1060 = vmatprep.mubr.msk.bf16.mxu0 %vm457_vm0, %v1220_v43  ;;  %1068 = vmatprep.mubr.msk.bf16.mxu1 %vm457_vm0, %v1222_v44 }
  0x66   : > { %602 = vmatmul.mubr.bf16.gmra.mrb[28].mxu0 %v1224_v45  ;;  %666 = vmatmul.mubr.bf16.gmra.mrb[28].mxu1 %v1225_v46 }
 0x101   : > { %v547_v48 = vpop.f32.mrb[0].mxu0  ;;  %v611_v50 = vpop.f32.mrb[0].mxu1 }
 0x102   : > { %v681_v51 = vmul.f32 %v1358_v47, %v547_v48  ;;  %v697_v52 = vmul.f32 %v1358_v47, %v611_v50  ;;  %v549_v53 = vpop.f32.mrb[1].mxu0  ;;  %v613_v54 = vpop.f32.mrb[1].mxu1 }
 0x103   : > { %v550_v55 = vpop.f32.mrb[2].mxu0  ;;  %v614_v56 = vpop.f32.mrb[2].mxu1 }
 0x104   : > { %v720_v57 = vadd.f32 %v1363_v49, %v681_v51  ;;  %v736_v58 = vadd.f32 %v1363_v49, %v697_v52  ;;  %v682_v59 = vmul.f32 %v1358_v47, %v550_v55  ;;  %v698_v60 = vmul.f32 %v1358_v47, %v614_v56  ;;  %v552_v61 = vpop.f32.mrb[3].mxu0  ;;  %v616_v62 = vpop.f32.mrb[3].mxu1 }
 0x106   : > { %v752_v63 = vmax.f32 %v720_v57, 0.0  ;;  %v768_v0 = vmax.f32 %v736_v58, 0.0  ;;  %v721_v1 = vadd.f32 %v1363_v49, %v682_v59  ;;  %v737_v2 = vadd.f32 %v1363_v49, %v698_v60 }
 0x108   : > { %v1106_v3 = vpack.c.bf16 %v752_v63, %v752_v63  ;;  %v1122_v4 = vpack.c.bf16 %v768_v0, %v768_v0  ;;  %v753_v5 = vmax.f32 %v721_v1, 0.0  ;;  %v769_v6 = vmax.f32 %v737_v2, 0.0 }
 0x109   : > { %v555_v7 = vpop.f32.mrb[4].mxu0  ;;  %v619_v8 = vpop.f32.mrb[4].mxu1 }
 0x10a   : > { %913 = vst.msk [vmem:[%s1377_s23] sm:$0xf] %vm912_vm3, %v1106_v3  ;;  %929 = vst.msk [vmem:[%s1377_s23 + $0x40] sm:$0xf] %vm912_vm3, %v1122_v4  ;;  %v1107_v9 = vpack.c.bf16 %v753_v5, %v753_v5  ;;  %v1123_v10 = vpack.c.bf16 %v769_v6, %v769_v6  ;;  %v683_v11 = vmul.f32 %v1358_v47, %v555_v7  ;;  %v557_v13 = vpop.f32.mrb[5].mxu0  ;;  %v621_v14 = vpop.f32.mrb[5].mxu1 }
 0x10b   : > { %v699_v12 = vmul.f32 %v1358_v47, %v619_v8  ;;  %v558_v15 = vpop.f32.mrb[6].mxu0  ;;  %v622_v16 = vpop.f32.mrb[6].mxu1 }
 0x10c   : > { %914 = vst.msk [vmem:[%s1377_s23 + $0x4] sm:$0xf] %vm912_vm3, %v1107_v9  ;;  %930 = vst.msk [vmem:[%s1377_s23 + $0x44] sm:$0xf] %vm912_vm3, %v1123_v10  ;;  %v722_v17 = vadd.f32 %v1363_v49, %v683_v11  ;;  %v684_v19 = vmul.f32 %v1358_v47, %v558_v15  ;;  %v700_v20 = vmul.f32 %v1358_v47, %v622_v16  ;;  %v560_v21 = vpop.f32.mrb[7].mxu0  ;;  %v624_v22 = vpop.f32.mrb[7].mxu1 }
 0x10d   : > { %v738_v18 = vadd.f32 %v1363_v49, %v699_v12 }
 0x10e   : > { %v754_v23 = vmax.f32 %v722_v17, 0.0  ;;  %v723_v25 = vadd.f32 %v1363_v49, %v684_v19  ;;  %v739_v26 = vadd.f32 %v1363_v49, %v700_v20 }
 0x10f   : > { %v770_v24 = vmax.f32 %v738_v18, 0.0 }
 0x110   : > { %v1108_v27 = vpack.c.bf16 %v754_v23, %v754_v23  ;;  %v755_v29 = vmax.f32 %v723_v25, 0.0  ;;  %v771_v30 = vmax.f32 %v739_v26, 0.0 }
 0x111   : > { %v1124_v28 = vpack.c.bf16 %v770_v24, %v770_v24  ;;  %v563_v31 = vpop.f32.mrb[8].mxu0  ;;  %v627_v32 = vpop.f32.mrb[8].mxu1 }
 0x112   : > { %915 = vst.msk [vmem:[%s1377_s23 + $0x8] sm:$0xf] %vm912_vm3, %v1108_v27  ;;  %v1109_v33 = vpack.c.bf16 %v755_v29, %v755_v29  ;;  %v1125_v34 = vpack.c.bf16 %v771_v30, %v771_v30  ;;  %v685_v35 = vmul.f32 %v1358_v47, %v563_v31  ;;  %v701_v36 = vmul.f32 %v1358_v47, %v627_v32  ;;  %v565_v37 = vpop.f32.mrb[9].mxu0  ;;  %v629_v38 = vpop.f32.mrb[9].mxu1 }
 0x113   : > { %931 = vst.msk [vmem:[%s1377_s23 + $0x48] sm:$0xf] %vm912_vm3, %v1124_v28  ;;  %v566_v39 = vpop.f32.mrb[10].mxu0  ;;  %v630_v40 = vpop.f32.mrb[10].mxu1 }
 0x114   : > { %916 = vst.msk [vmem:[%s1377_s23 + $0xc] sm:$0xf] %vm912_vm3, %v1109_v33  ;;  %932 = vst.msk [vmem:[%s1377_s23 + $0x4c] sm:$0xf] %vm912_vm3, %v1125_v34  ;;  %v724_v41 = vadd.f32 %v1363_v49, %v685_v35  ;;  %v740_v42 = vadd.f32 %v1363_v49, %v701_v36  ;;  %v686_v43 = vmul.f32 %v1358_v47, %v566_v39  ;;  %v568_v45 = vpop.f32.mrb[11].mxu0  ;;  %v632_v46 = vpop.f32.mrb[11].mxu1 }
 0x115   : > { %v702_v44 = vmul.f32 %v1358_v47, %v630_v40 }
 0x116   : > { %v756_v48 = vmax.f32 %v724_v41, 0.0  ;;  %v772_v50 = vmax.f32 %v740_v42, 0.0  ;;  %v725_v51 = vadd.f32 %v1363_v49, %v686_v43 }
 0x117   : > { %v741_v52 = vadd.f32 %v1363_v49, %v702_v44 }
 0x118   : > { %v1110_v53 = vpack.c.bf16 %v756_v48, %v756_v48  ;;  %v1126_v54 = vpack.c.bf16 %v772_v50, %v772_v50  ;;  %v757_v55 = vmax.f32 %v725_v51, 0.0 }
 0x119   : > { %v773_v56 = vmax.f32 %v741_v52, 0.0  ;;  %v571_v57 = vpop.f32.mrb[12].mxu0  ;;  %v635_v58 = vpop.f32.mrb[12].mxu1 }
 0x11a   : > { %917 = vst.msk [vmem:[%s1377_s23 + $0x10] sm:$0xf] %vm912_vm3, %v1110_v53  ;;  %933 = vst.msk [vmem:[%s1377_s23 + $0x50] sm:$0xf] %vm912_vm3, %v1126_v54  ;;  %v1111_v59 = vpack.c.bf16 %v757_v55, %v757_v55  ;;  %v687_v61 = vmul.f32 %v1358_v47, %v571_v57  ;;  %v703_v62 = vmul.f32 %v1358_v47, %v635_v58  ;;  %v573_v63 = vpop.f32.mrb[13].mxu0  ;;  %v637_v0 = vpop.f32.mrb[13].mxu1 }
 0x11b   : > { %v1127_v60 = vpack.c.bf16 %v773_v56, %v773_v56  ;;  %v574_v1 = vpop.f32.mrb[14].mxu0  ;;  %v638_v2 = vpop.f32.mrb[14].mxu1 }
 0x11c   : > { %918 = vst.msk [vmem:[%s1377_s23 + $0x14] sm:$0xf] %vm912_vm3, %v1111_v59  ;;  %v726_v3 = vadd.f32 %v1363_v49, %v687_v61  ;;  %v742_v4 = vadd.f32 %v1363_v49, %v703_v62  ;;  %v688_v5 = vmul.f32 %v1358_v47, %v574_v1  ;;  %v704_v6 = vmul.f32 %v1358_v47, %v638_v2  ;;  %v576_v7 = vpop.f32.mrb[15].mxu0  ;;  %v640_v8 = vpop.f32.mrb[15].mxu1 }
 0x11d   : > { %934 = vst.msk [vmem:[%s1377_s23 + $0x54] sm:$0xf] %vm912_vm3, %v1127_v60 }
 0x11e   : > { %v758_v9 = vmax.f32 %v726_v3, 0.0  ;;  %v774_v10 = vmax.f32 %v742_v4, 0.0  ;;  %v727_v11 = vadd.f32 %v1363_v49, %v688_v5  ;;  %v743_v12 = vadd.f32 %v1363_v49, %v704_v6 }
 0x120   : > { %v1112_v13 = vpack.c.bf16 %v758_v9, %v758_v9  ;;  %v1128_v14 = vpack.c.bf16 %v774_v10, %v774_v10  ;;  %v759_v15 = vmax.f32 %v727_v11, 0.0  ;;  %v775_v16 = vmax.f32 %v743_v12, 0.0 }
 0x121   : > { %v579_v17 = vpop.f32.mrb[16].mxu0  ;;  %v643_v18 = vpop.f32.mrb[16].mxu1 }
 0x122   : > { %919 = vst.msk [vmem:[%s1377_s23 + $0x18] sm:$0xf] %vm912_vm3, %v1112_v13  ;;  %935 = vst.msk [vmem:[%s1377_s23 + $0x58] sm:$0xf] %vm912_vm3, %v1128_v14  ;;  %v1113_v19 = vpack.c.bf16 %v759_v15, %v759_v15  ;;  %v1129_v20 = vpack.c.bf16 %v775_v16, %v775_v16  ;;  %v689_v21 = vmul.f32 %v1358_v47, %v579_v17  ;;  %v581_v23 = vpop.f32.mrb[17].mxu0  ;;  %v645_v24 = vpop.f32.mrb[17].mxu1 }
 0x123   : > { %v705_v22 = vmul.f32 %v1358_v47, %v643_v18  ;;  %v582_v25 = vpop.f32.mrb[18].mxu0  ;;  %v646_v26 = vpop.f32.mrb[18].mxu1 }
 0x124   : > { %920 = vst.msk [vmem:[%s1377_s23 + $0x1c] sm:$0xf] %vm912_vm3, %v1113_v19  ;;  %936 = vst.msk [vmem:[%s1377_s23 + $0x5c] sm:$0xf] %vm912_vm3, %v1129_v20  ;;  %v728_v27 = vadd.f32 %v1363_v49, %v689_v21  ;;  %v690_v29 = vmul.f32 %v1358_v47, %v582_v25  ;;  %v706_v30 = vmul.f32 %v1358_v47, %v646_v26  ;;  %v584_v31 = vpop.f32.mrb[19].mxu0  ;;  %v648_v32 = vpop.f32.mrb[19].mxu1 }
 0x125   : > { %v744_v28 = vadd.f32 %v1363_v49, %v705_v22 }
 0x126   : > { %v760_v33 = vmax.f32 %v728_v27, 0.0  ;;  %v729_v35 = vadd.f32 %v1363_v49, %v690_v29  ;;  %v745_v36 = vadd.f32 %v1363_v49, %v706_v30 }
 0x127   : > { %v776_v34 = vmax.f32 %v744_v28, 0.0 }
 0x128   : > { %v1114_v37 = vpack.c.bf16 %v760_v33, %v760_v33  ;;  %v761_v39 = vmax.f32 %v729_v35, 0.0  ;;  %v777_v40 = vmax.f32 %v745_v36, 0.0 }
 0x129   : > { %v1130_v38 = vpack.c.bf16 %v776_v34, %v776_v34  ;;  %v587_v41 = vpop.f32.mrb[20].mxu0  ;;  %v651_v42 = vpop.f32.mrb[20].mxu1 }
 0x12a   : > { %921 = vst.msk [vmem:[%s1377_s23 + $0x20] sm:$0xf] %vm912_vm3, %v1114_v37  ;;  %v1115_v43 = vpack.c.bf16 %v761_v39, %v761_v39  ;;  %v1131_v44 = vpack.c.bf16 %v777_v40, %v777_v40  ;;  %v691_v45 = vmul.f32 %v1358_v47, %v587_v41  ;;  %v707_v46 = vmul.f32 %v1358_v47, %v651_v42  ;;  %v589_v48 = vpop.f32.mrb[21].mxu0  ;;  %v653_v50 = vpop.f32.mrb[21].mxu1 }
 0x12b   : > { %937 = vst.msk [vmem:[%s1377_s23 + $0x60] sm:$0xf] %vm912_vm3, %v1130_v38  ;;  %v590_v51 = vpop.f32.mrb[22].mxu0  ;;  %v654_v52 = vpop.f32.mrb[22].mxu1 }
 0x12c   : > { %922 = vst.msk [vmem:[%s1377_s23 + $0x24] sm:$0xf] %vm912_vm3, %v1115_v43  ;;  %938 = vst.msk [vmem:[%s1377_s23 + $0x64] sm:$0xf] %vm912_vm3, %v1131_v44  ;;  %v730_v53 = vadd.f32 %v1363_v49, %v691_v45  ;;  %v746_v54 = vadd.f32 %v1363_v49, %v707_v46  ;;  %v692_v55 = vmul.f32 %v1358_v47, %v590_v51  ;;  %v592_v57 = vpop.f32.mrb[23].mxu0  ;;  %v656_v58 = vpop.f32.mrb[23].mxu1 }
 0x12d   : > { %v708_v56 = vmul.f32 %v1358_v47, %v654_v52 }
 0x12e   : > { %v762_v59 = vmax.f32 %v730_v53, 0.0  ;;  %v778_v60 = vmax.f32 %v746_v54, 0.0  ;;  %v731_v61 = vadd.f32 %v1363_v49, %v692_v55 }
 0x12f   : > { %v747_v62 = vadd.f32 %v1363_v49, %v708_v56 }
 0x130   : > { %v1116_v63 = vpack.c.bf16 %v762_v59, %v762_v59  ;;  %v1132_v0 = vpack.c.bf16 %v778_v60, %v778_v60  ;;  %v763_v1 = vmax.f32 %v731_v61, 0.0 }
 0x131   : > { %v779_v2 = vmax.f32 %v747_v62, 0.0  ;;  %v595_v3 = vpop.f32.mrb[24].mxu0  ;;  %v659_v4 = vpop.f32.mrb[24].mxu1 }
 0x132   : > { %923 = vst.msk [vmem:[%s1377_s23 + $0x28] sm:$0xf] %vm912_vm3, %v1116_v63  ;;  %939 = vst.msk [vmem:[%s1377_s23 + $0x68] sm:$0xf] %vm912_vm3, %v1132_v0  ;;  %v1117_v5 = vpack.c.bf16 %v763_v1, %v763_v1  ;;  %v693_v7 = vmul.f32 %v1358_v47, %v595_v3  ;;  %v709_v8 = vmul.f32 %v1358_v47, %v659_v4  ;;  %v597_v9 = vpop.f32.mrb[25].mxu0  ;;  %v661_v10 = vpop.f32.mrb[25].mxu1 }
 0x133   : > { %v1133_v6 = vpack.c.bf16 %v779_v2, %v779_v2  ;;  %v598_v11 = vpop.f32.mrb[26].mxu0  ;;  %v662_v12 = vpop.f32.mrb[26].mxu1 }
 0x134   : > { %924 = vst.msk [vmem:[%s1377_s23 + $0x2c] sm:$0xf] %vm912_vm3, %v1117_v5  ;;  %v732_v13 = vadd.f32 %v1363_v49, %v693_v7  ;;  %v748_v14 = vadd.f32 %v1363_v49, %v709_v8  ;;  %v694_v15 = vmul.f32 %v1358_v47, %v598_v11  ;;  %v710_v16 = vmul.f32 %v1358_v47, %v662_v12  ;;  %v600_v17 = vpop.f32.mrb[27].mxu0  ;;  %v664_v18 = vpop.f32.mrb[27].mxu1 }
 0x135   : > { %940 = vst.msk [vmem:[%s1377_s23 + $0x6c] sm:$0xf] %vm912_vm3, %v1133_v6 }
 0x136   : > { %v764_v19 = vmax.f32 %v732_v13, 0.0  ;;  %v780_v20 = vmax.f32 %v748_v14, 0.0  ;;  %v733_v21 = vadd.f32 %v1363_v49, %v694_v15  ;;  %v749_v22 = vadd.f32 %v1363_v49, %v710_v16 }
 0x138   : > { %v1118_v23 = vpack.c.bf16 %v764_v19, %v764_v19  ;;  %v1134_v24 = vpack.c.bf16 %v780_v20, %v780_v20  ;;  %v765_v25 = vmax.f32 %v733_v21, 0.0  ;;  %v781_v26 = vmax.f32 %v749_v22, 0.0 }
 0x139   : > { %v603_v27 = vpop.f32.mrb[28].mxu0  ;;  %v667_v28 = vpop.f32.mrb[28].mxu1 }
 0x13a   : > { %925 = vst.msk [vmem:[%s1377_s23 + $0x30] sm:$0xf] %vm912_vm3, %v1118_v23  ;;  %941 = vst.msk [vmem:[%s1377_s23 + $0x70] sm:$0xf] %vm912_vm3, %v1134_v24  ;;  %v1119_v29 = vpack.c.bf16 %v765_v25, %v765_v25  ;;  %v1135_v30 = vpack.c.bf16 %v781_v26, %v781_v26  ;;  %v695_v31 = vmul.f32 %v1358_v47, %v603_v27  ;;  %v605_v33 = vpop.f32.mrb[29].mxu0  ;;  %v669_v34 = vpop.f32.mrb[29].mxu1 }
 0x13b   : > { %v711_v32 = vmul.f32 %v1358_v47, %v667_v28  ;;  %v606_v35 = vpop.f32.mrb[30].mxu0  ;;  %v670_v36 = vpop.f32.mrb[30].mxu1 }
 0x13c   : > { %926 = vst.msk [vmem:[%s1377_s23 + $0x34] sm:$0xf] %vm912_vm3, %v1119_v29  ;;  %942 = vst.msk [vmem:[%s1377_s23 + $0x74] sm:$0xf] %vm912_vm3, %v1135_v30  ;;  %v734_v37 = vadd.f32 %v1363_v49, %v695_v31  ;;  %v696_v39 = vmul.f32 %v1358_v47, %v606_v35  ;;  %v712_v40 = vmul.f32 %v1358_v47, %v670_v36  ;;  %v608_v41 = vpop.f32.mrb[31].mxu0  ;;  %v672_v42 = vpop.f32.mrb[31].mxu1 }
 0x13d   : > { %v750_v38 = vadd.f32 %v1363_v49, %v711_v32 }
 0x13e   : > { %v766_v43 = vmax.f32 %v734_v37, 0.0  ;;  %v735_v45 = vadd.f32 %v1363_v49, %v696_v39  ;;  %v751_v46 = vadd.f32 %v1363_v49, %v712_v40 }
 0x13f   : > { %v782_v44 = vmax.f32 %v750_v38, 0.0 }
 0x140   : > { %v1120_v48 = vpack.c.bf16 %v766_v43, %v766_v43  ;;  %v767_v51 = vmax.f32 %v735_v45, 0.0  ;;  %v783_v52 = vmax.f32 %v751_v46, 0.0 }
 0x141   : > { %v1136_v50 = vpack.c.bf16 %v782_v44, %v782_v44 }
 0x142   : > { %927 = vst.msk [vmem:[%s1377_s23 + $0x38] sm:$0xf] %vm912_vm3, %v1120_v48  ;;  %v1121_v53 = vpack.c.bf16 %v767_v51, %v767_v51  ;;  %v1137_v54 = vpack.c.bf16 %v783_v52, %v783_v52 }
 0x143   : > { %943 = vst.msk [vmem:[%s1377_s23 + $0x78] sm:$0xf] %vm912_vm3, %v1136_v50 }
 0x144   : > { %928 = vst.msk [vmem:[%s1377_s23 + $0x3c] sm:$0xf] %vm912_vm3, %v1121_v53  ;;  %944 = vst.msk [vmem:[%s1377_s23 + $0x7c] sm:$0xf] %vm912_vm3, %v1137_v54 }
 0x145 PF: > { %s14_s15 = sadd.s32 1, %s1232_s15  }
 0x146   : > { %p11_p4 = scmp.ge.s32.totalorder %s14_s15, 4  }
 0x148   :  { %13 = sbr.rel (!%p11_p4) target bundleno = 1 (0x1), region = 66 }

</bundles_post_ra>
